<compile_context>
chip_gen: v5e
topology: v5e:2x2
jax: 0.10.0
libtpu: 0.0.40
codegen_flags: <defaults>
</compile_context>

<pallas_src>
import functools

import jax
import jax.numpy as jnp
import numpy as np
from jax.experimental import pallas as pl
from jax.experimental.pallas import tpu as pltpu


# ---------------------------------------------------------------------------
# Helpers for a single-block pallas_call (everything fits in VMEM at this size).
# ---------------------------------------------------------------------------

def _zero_index_map(ndim):
    return lambda i: (0,) * ndim


def _full_specs(arrays):
    return [pl.BlockSpec(a.shape, _zero_index_map(a.ndim)) for a in arrays]


# ---------------------------------------------------------------------------
# Fused forward kernel
# ---------------------------------------------------------------------------

def make_fused_kernel(cfg, nb, n_lin):
    k1 = cfg["k1"]
    ho1, wo1, cout1 = cfg["ho1"], cfg["wo1"], cfg["cout1"]
    k2, ho2, wo2, cout2 = cfg["k2"], cfg["ho2"], cfg["wo2"], cfg["cout2"]
    n_dh = (k1 + 1) // 2          # distinct conv1 row taps after the stride-2 phase split
    t1 = ho1 // 2                 # conv1 output rows per parity pass (per sample)
    hh2 = ho2 + 1                 # conv2 input rows per row-phase (per sample)
    wcol1 = wo1 * cout1           # conv1 merged width == conv2 contraction size
    wcol2 = wo2 * cout2

    def kernel(*refs):
        (phe_ref, pho_ref, wf1_ref, b1_ref, wd2_ref, b2_ref) = refs[:6]
        lin_refs = refs[6:6 + 2 * n_lin]
        o_ref = refs[6 + 2 * n_lin]
        a_ref = refs[6 + 2 * n_lin + 1]       # VMEM scratch: conv1 -> conv2 handoff

        # ----- conv1 (k1 x k1, stride 2): two passes, one per output-row parity ------
        # Batch and output rows share the matmul M dim; kw taps / W-stride / phases are
        # folded into wf1 so each term is one clean 2-D MXU dot, no lane rotates.
        def conv1_pass(parity):
            acc = jnp.zeros((t1 * nb, wcol1), jnp.float32)
            for dh in range(n_dh):
                src_parity = (dh + parity) % 2
                q = (dh + parity) // 2
                src = phe_ref if src_parity == 0 else pho_ref
                patch = src[q * nb:(q + t1) * nb, :]           # (t1*nb, 4*Wh1*Cin1)
                acc = acc + jnp.dot(patch, wf1_ref[dh],
                                    preferred_element_type=jnp.float32)
            return jnp.maximum(acc + b1_ref[...], 0.0)         # (t1*nb, Wo1*Cout1)

        y_even = conv1_pass(0)     # row t*nb + n  ==  relu(conv1)[n, 2t,   :, :] (merged)
        y_odd = conv1_pass(1)      # row t*nb + n  ==  relu(conv1)[n, 2t+1, :, :] (merged)

        # ----- conv1 -> conv2 handoff through a VMEM row-phase scratch ---------------
        # a_ref[a, r*nb + n, :] == H-zero-padded conv1 activation row 2r + a of sample n.
        zrow = jnp.zeros((nb, wcol1), jnp.float32)
        a_ref[0, 0:nb, :] = zrow                               # top zero-pad row
        a_ref[0, nb:hh2 * nb, :] = y_odd
        a_ref[1, 0:(hh2 - 1) * nb, :] = y_even
        a_ref[1, (hh2 - 1) * nb:hh2 * nb, :] = zrow            # bottom zero-pad row

        # ----- conv2 (3x3, stride 2): one matmul per kh tap --------------------------
        # kw taps, the W stride-2 gather and the W zero padding are folded into wd2.
        acc2 = jnp.zeros((ho2 * nb, wcol2), jnp.float32)
        for kh in range(k2):
            a, dh = kh % 2, kh // 2
            patch = a_ref[a, dh * nb:(dh + ho2) * nb, :]       # (ho2*nb, Wo1*Cout1)
            acc2 = acc2 + jnp.dot(patch, wd2_ref[kh],
                                  preferred_element_type=jnp.float32)
        z2 = jnp.maximum(acc2 + b2_ref[...], 0.0)              # rows (i2, n), cols (j2, co)

        # ----- global spatial max -----------------------------------------------------
        m = z2[0:nb, :]
        for i2 in range(1, ho2):                               # reduce output rows
            m = jnp.maximum(m, z2[i2 * nb:(i2 + 1) * nb, :])
        pooled = m[:, 0:cout2]                                 # reduce the Wo2 lane blocks
        for j2 in range(1, wo2):
            pooled = jnp.maximum(pooled, m[:, j2 * cout2:(j2 + 1) * cout2])   # (nb, Cout2)

        # ----- classifier MLP (whole batch at once) + softmax -------------------------
        h = pooled
        for li in range(n_lin):
            w = lin_refs[2 * li][...]
            b = lin_refs[2 * li + 1][...]
            h = jnp.dot(h, w, preferred_element_type=jnp.float32) + b
            if li < n_lin - 1:
                h = jnp.maximum(h, 0.0)
        mx = jnp.max(h, axis=1, keepdims=True)
        e = jnp.exp(h - mx)
        o_ref[...] = e / jnp.sum(e, axis=1, keepdims=True)     # exact divide (1e-5 check)

    return kernel


# ---------------------------------------------------------------------------
# Forward pass: thin wrapper (input layout plumbing) + ONE pallas_call
# ---------------------------------------------------------------------------

def convnet_forward(prep, x_nchw):
    cfg = prep["cfg"]
    nb = x_nchw.shape[0]
    x = jnp.transpose(x_nchw, (0, 2, 3, 1)).astype(jnp.float32)   # NCHW -> NHWC

    # Conv1 input prep (pure layout plumbing on the XLA side): pad, stride-2 phase
    # split, concatenate the 4 phases + channels along the contraction dim, split rows
    # by output-row parity and put the batch minor on the row (M) dim.
    k1, pad1 = cfg["k1"], cfg["pad1"]
    ho1, wo1, cin1 = cfg["ho1"], cfg["wo1"], cfg["cin1"]
    hh1 = (k1 - 1) // 2 + ho1
    wh1 = (k1 - 1) // 2 + wo1
    h, w = x.shape[1], x.shape[2]
    bot_h = max(pad1, 2 * hh1 - h - pad1)
    bot_w = max(pad1, 2 * wh1 - w - pad1)
    xp = jnp.pad(x, ((0, 0), (pad1, bot_h), (pad1, bot_w), (0, 0)))
    phases = [xp[:, a:a + 2 * hh1:2, b:b + 2 * wh1:2, :]          # (nb, hh1, wh1, cin1)
              for a in (0, 1) for b in (0, 1)]
    kdim = 4 * wh1 * cin1
    phc = jnp.stack(phases, axis=2).reshape(nb, hh1, kdim)        # cols = (phase, s, ci)
    ph_e = phc[:, 0::2, :].transpose(1, 0, 2).reshape(-1, kdim)   # (ceil(hh1/2)*nb, kdim)
    ph_o = phc[:, 1::2, :].transpose(1, 0, 2).reshape(-1, kdim)   # ((hh1//2)*nb,   kdim)

    flat = [ph_e, ph_o, prep["wf1"], prep["b1t"], prep["wd2"], prep["b2t"]]
    for wl, bl in prep["linear"]:
        flat += [wl, bl]
    n_lin = len(prep["linear"])
    n_cls = prep["linear"][-1][0].shape[1]

    kernel = make_fused_kernel(cfg, nb, n_lin)
    hh2 = cfg["ho2"] + 1
    return pl.pallas_call(
        kernel,
        out_shape=jax.ShapeDtypeStruct((nb, n_cls), jnp.float32),
        grid=(1,),
        in_specs=_full_specs(flat),
        out_specs=pl.BlockSpec((nb, n_cls), _zero_index_map(2)),
        scratch_shapes=[pltpu.VMEM((2, hh2 * nb, cfg["wo1"] * cfg["cout1"]),
                                   jnp.float32)],
        compiler_params=pltpu.CompilerParams(dimension_semantics=("arbitrary",)),
    )(*flat)


# ---------------------------------------------------------------------------
# Parameters: PyTorch-like init + one-time Pallas layout preparation
# ---------------------------------------------------------------------------

def init_params(key, conv_layers, linear_layers):
    """PyTorch-default-style (U(-1/sqrt(fan_in), ...)) parameters for the reference net."""
    params = {"conv": [], "linear": []}
    ksizes = [7] + [3] * (len(conv_layers) - 2)
    c_in = conv_layers[0]
    for i, c_out in enumerate(conv_layers[1:]):
        k = ksizes[i]
        key, kw_, kb_ = jax.random.split(key, 3)
        bound = 1.0 / np.sqrt(c_in * k * k)
        w = jax.random.uniform(kw_, (c_out, c_in, k, k), jnp.float32, -bound, bound)
        b = jax.random.uniform(kb_, (c_out,), jnp.float32, -bound, bound)
        params["conv"].append((w, b, k))
        c_in = c_out
    for l_out in linear_layers:
        key, kw_, kb_ = jax.random.split(key, 3)
        bound = 1.0 / np.sqrt(c_in)
        w = jax.random.uniform(kw_, (l_out, c_in), jnp.float32, -bound, bound)
        b = jax.random.uniform(kb_, (l_out,), jnp.float32, -bound, bound)
        params["linear"].append((w, b))
        c_in = l_out
    return params


def prepare_pallas_params(params, input_hw):
    """One-time weight layout prep (all folding hoisted out of the forward hot path)."""
    assert len(params["conv"]) == 2, "fused kernel supports exactly two conv layers"
    (w1, b1, k1), (w2, b2, k2) = params["conv"]
    h, w = input_hw
    pad1, pad2 = 3, 1
    cout1, cin1 = w1.shape[0], w1.shape[1]
    cout2, cin2 = w2.shape[0], w2.shape[1]
    assert cin2 == cout1 and k2 == 3
    ho1 = (h + 2 * pad1 - k1) // 2 + 1
    wo1 = (w + 2 * pad1 - k1) // 2 + 1
    ho2 = (ho1 + 2 * pad2 - k2) // 2 + 1
    wo2 = (wo1 + 2 * pad2 - k2) // 2 + 1
    assert ho1 % 2 == 0, "even/odd output-row split of conv1 assumes an even conv1 height"
    wh1 = (k1 - 1) // 2 + wo1
    n_dh = (k1 + 1) // 2

    # conv1: fold kw taps + W stride-2 gather into one weight matrix per row tap dh.
    # Row index = phase*Wh1*Cin1 + (j+dw)*Cin1 + ci ; col index = j*Cout1 + co.
    w1n = np.asarray(w1, np.float32)
    wf1 = np.zeros((n_dh, 4 * wh1 * cin1, wo1 * cout1), np.float32)
    for kh in range(k1):
        dh, a = kh // 2, kh % 2
        for kw in range(k1):
            dw, b = kw // 2, kw % 2
            p = 2 * a + b
            blk = w1n[:, :, kh, kw].T                          # (cin1, cout1)
            for j in range(wo1):
                r0 = p * wh1 * cin1 + (j + dw) * cin1
                wf1[dh, r0:r0 + cin1, j * cout1:(j + 1) * cout1] += blk
    b1t = np.tile(np.asarray(b1, np.float32), wo1).reshape(1, wo1 * cout1)

    # conv2: fold kw taps + W stride-2 gather + W zero padding into per-kh weights.
    # Row index = c*Cin2 + ci (c = unpadded conv1 output column) ; col = j2*Cout2 + co.
    w2n = np.asarray(w2, np.float32)
    wd2 = np.zeros((k2, wo1 * cin2, wo2 * cout2), np.float32)
    for kh in range(k2):
        for kw in range(k2):
            blk = w2n[:, :, kh, kw].T                          # (cin2, cout2)
            for j in range(wo2):
                c = 2 * j + kw - pad2
                if 0 <= c < wo1:
                    wd2[kh, c * cin2:(c + 1) * cin2,
                        j * cout2:(j + 1) * cout2] += blk
    b2t = np.tile(np.asarray(b2, np.float32), wo2).reshape(1, wo2 * cout2)

    linear = [(jnp.asarray(np.asarray(wl, np.float32).T),
               jnp.asarray(np.asarray(bl, np.float32).reshape(1, -1)))
              for wl, bl in params["linear"]]

    cfg = dict(k1=k1, pad1=pad1, cin1=cin1, ho1=ho1, wo1=wo1, cout1=cout1,
               k2=k2, pad2=pad2, ho2=ho2, wo2=wo2, cout2=cout2)
    return {"cfg": cfg, "wf1": jnp.asarray(wf1), "b1t": jnp.asarray(b1t),
            "wd2": jnp.asarray(wd2), "b2t": jnp.asarray(b2t), "linear": linear}


# ---------------------------------------------------------------------------
# Pure-JAX reference (mirrors the PyTorch module) and test driver
# ---------------------------------------------------------------------------

def convnet_ref(params, x_nchw):
    x = x_nchw
    for i, (w, b, k) in enumerate(params["conv"]):
        pad = 3 if i == 0 else 1
        x = jax.lax.conv_general_dilated(
            x, w, window_strides=(2, 2), padding=[(pad, pad), (pad, pad)],
            dimension_numbers=("NCHW", "OIHW", "NCHW"))
        x = jnp.maximum(x + b[None, :, None, None], 0.0)
    z = jnp.max(x, axis=(2, 3))
    n_lin = len(params["linear"])
    for i, (w, b) in enumerate(params["linear"]):
        z = z @ w.T + b
        z = jnp.maximum(z, 0.0) if i < n_lin - 1 else jax.nn.softmax(z, axis=1)
    return z


if __name__ == "__main__":
    conv_layers = [4, 8, 16]       # Conv2d(4->8, k7 s2 p3), Conv2d(8->16, k3 s2 p1)
    linear_layers = [32, 10]       # Linear(16->32)+ReLU, Linear(32->10)+Softmax

    key = jax.random.PRNGKey(0)
    key, pkey, xkey = jax.random.split(key, 3)
    params = init_params(pkey, conv_layers, linear_layers)
    x = jax.random.normal(xkey, (2, 4, 16, 16), jnp.float32)       # NCHW, like PyTorch

    prep = prepare_pallas_params(params, input_hw=(16, 16))
    fwd = jax.jit(functools.partial(convnet_forward, prep))

    out = jax.block_until_ready(fwd(x))

    ref = jax.block_until_ready(convnet_ref(params, x))
    assert out.shape == (2, 10)
    assert np.allclose(np.asarray(out), np.asarray(ref), atol=1e-5, rtol=1e-5)

    print("KERNEL_OK")
</pallas_src>

<mosaic_0001>
module attributes {stable_mosaic.version = 11 : i64} {
  func.func @kernel(%arg0: i32, %arg1: memref<12x176xf32, #tpu.memory_space<vmem>>, %arg2: memref<10x176xf32, #tpu.memory_space<vmem>>, %arg3: memref<4x176x64xf32, #tpu.memory_space<vmem>>, %arg4: memref<1x64xf32, #tpu.memory_space<vmem>>, %arg5: memref<3x64x64xf32, #tpu.memory_space<vmem>>, %arg6: memref<1x64xf32, #tpu.memory_space<vmem>>, %arg7: memref<16x32xf32, #tpu.memory_space<vmem>>, %arg8: memref<1x32xf32, #tpu.memory_space<vmem>>, %arg9: memref<32x10xf32, #tpu.memory_space<vmem>>, %arg10: memref<1x10xf32, #tpu.memory_space<vmem>>, %arg11: memref<2x10xf32, #tpu.memory_space<vmem>>, %arg12: memref<2x10x64xf32, #tpu.memory_space<vmem>>) attributes {dimension_semantics = [#tpu.dimension_semantics<arbitrary>], iteration_bounds = array<i64: 1>, scalar_prefetch = 0 : i64, scratch_operands = 1 : i64, tpu.core_type = #tpu.core_type<tc>, window_params = [{pipeline_mode = #tpu.pipeline_mode<synchronous>, transform_indices = @transform_0, window_bounds = array<i64: 12, 176>}, {pipeline_mode = #tpu.pipeline_mode<synchronous>, transform_indices = @transform_1, window_bounds = array<i64: 10, 176>}, {pipeline_mode = #tpu.pipeline_mode<synchronous>, transform_indices = @transform_2, window_bounds = array<i64: 4, 176, 64>}, {pipeline_mode = #tpu.pipeline_mode<synchronous>, transform_indices = @transform_3, window_bounds = array<i64: 1, 64>}, {pipeline_mode = #tpu.pipeline_mode<synchronous>, transform_indices = @transform_4, window_bounds = array<i64: 3, 64, 64>}, {pipeline_mode = #tpu.pipeline_mode<synchronous>, transform_indices = @transform_5, window_bounds = array<i64: 1, 64>}, {pipeline_mode = #tpu.pipeline_mode<synchronous>, transform_indices = @transform_6, window_bounds = array<i64: 16, 32>}, {pipeline_mode = #tpu.pipeline_mode<synchronous>, transform_indices = @transform_7, window_bounds = array<i64: 1, 32>}, {pipeline_mode = #tpu.pipeline_mode<synchronous>, transform_indices = @transform_8, window_bounds = array<i64: 32, 10>}, {pipeline_mode = #tpu.pipeline_mode<synchronous>, transform_indices = @transform_9, window_bounds = array<i64: 1, 10>}, {pipeline_mode = #tpu.pipeline_mode<synchronous>, transform_indices = @transform_10, window_bounds = array<i64: 2, 10>}]} {
    %cst = arith.constant 0.000000e+00 : f32
    %0 = vector.broadcast %cst : f32 to vector<8x64xf32>
    %c0 = arith.constant 0 : index
    %c0_0 = arith.constant 0 : index
    %1 = vector.load %arg1[%c0, %c0_0] : memref<12x176xf32, #tpu.memory_space<vmem>>, vector<8x176xf32>
    %c0_1 = arith.constant 0 : index
    %c0_2 = arith.constant 0 : index
    %c0_3 = arith.constant 0 : index
    %2 = vector.load %arg3[%c0_1, %c0_2, %c0_3] : memref<4x176x64xf32, #tpu.memory_space<vmem>>, vector<1x176x64xf32>
    %3 = vector.shape_cast %2 : vector<1x176x64xf32> to vector<176x64xf32>
    %cst_4 = arith.constant dense<0.000000e+00> : vector<8x64xf32>
    %4 = tpu.matmul %1, %3, %cst_4 {dimension_numbers = #tpu.dot_dimension_numbers<[1], [0], [0], [1], [0, 0, 1, 1], [], []>} : vector<8x176xf32>, vector<176x64xf32>, vector<8x64xf32> -> vector<8x64xf32>
    %5 = arith.addf %0, %4 : vector<8x64xf32>
    %c0_5 = arith.constant 0 : index
    %c0_6 = arith.constant 0 : index
    %6 = vector.load %arg2[%c0_5, %c0_6] : memref<10x176xf32, #tpu.memory_space<vmem>>, vector<8x176xf32>
    %c1 = arith.constant 1 : index
    %c0_7 = arith.constant 0 : index
    %c0_8 = arith.constant 0 : index
    %7 = vector.load %arg3[%c1, %c0_7, %c0_8] : memref<4x176x64xf32, #tpu.memory_space<vmem>>, vector<1x176x64xf32>
    %8 = vector.shape_cast %7 : vector<1x176x64xf32> to vector<176x64xf32>
    %cst_9 = arith.constant dense<0.000000e+00> : vector<8x64xf32>
    %9 = tpu.matmul %6, %8, %cst_9 {dimension_numbers = #tpu.dot_dimension_numbers<[1], [0], [0], [1], [0, 0, 1, 1], [], []>} : vector<8x176xf32>, vector<176x64xf32>, vector<8x64xf32> -> vector<8x64xf32>
    %10 = arith.addf %5, %9 : vector<8x64xf32>
    %c2 = arith.constant 2 : index
    %c0_10 = arith.constant 0 : index
    %11 = vector.load %arg1[%c2, %c0_10] : memref<12x176xf32, #tpu.memory_space<vmem>>, vector<8x176xf32>
    %c2_11 = arith.constant 2 : index
    %c0_12 = arith.constant 0 : index
    %c0_13 = arith.constant 0 : index
    %12 = vector.load %arg3[%c2_11, %c0_12, %c0_13] : memref<4x176x64xf32, #tpu.memory_space<vmem>>, vector<1x176x64xf32>
    %13 = vector.shape_cast %12 : vector<1x176x64xf32> to vector<176x64xf32>
    %cst_14 = arith.constant dense<0.000000e+00> : vector<8x64xf32>
    %14 = tpu.matmul %11, %13, %cst_14 {dimension_numbers = #tpu.dot_dimension_numbers<[1], [0], [0], [1], [0, 0, 1, 1], [], []>} : vector<8x176xf32>, vector<176x64xf32>, vector<8x64xf32> -> vector<8x64xf32>
    %15 = arith.addf %10, %14 : vector<8x64xf32>
    %c2_15 = arith.constant 2 : index
    %c0_16 = arith.constant 0 : index
    %16 = vector.load %arg2[%c2_15, %c0_16] : memref<10x176xf32, #tpu.memory_space<vmem>>, vector<8x176xf32>
    %c3 = arith.constant 3 : index
    %c0_17 = arith.constant 0 : index
    %c0_18 = arith.constant 0 : index
    %17 = vector.load %arg3[%c3, %c0_17, %c0_18] : memref<4x176x64xf32, #tpu.memory_space<vmem>>, vector<1x176x64xf32>
    %18 = vector.shape_cast %17 : vector<1x176x64xf32> to vector<176x64xf32>
    %cst_19 = arith.constant dense<0.000000e+00> : vector<8x64xf32>
    %19 = tpu.matmul %16, %18, %cst_19 {dimension_numbers = #tpu.dot_dimension_numbers<[1], [0], [0], [1], [0, 0, 1, 1], [], []>} : vector<8x176xf32>, vector<176x64xf32>, vector<8x64xf32> -> vector<8x64xf32>
    %20 = arith.addf %15, %19 : vector<8x64xf32>
    %c0_20 = arith.constant 0 : index
    %c0_21 = arith.constant 0 : index
    %21 = vector.load %arg4[%c0_20, %c0_21] : memref<1x64xf32, #tpu.memory_space<vmem>>, vector<1x64xf32>
    %22 = vector.broadcast %21 : vector<1x64xf32> to vector<8x64xf32>
    %23 = arith.addf %20, %22 : vector<8x64xf32>
    %cst_22 = arith.constant 0.000000e+00 : f32
    %24 = vector.broadcast %cst_22 : f32 to vector<8x64xf32>
    %25 = arith.maximumf %23, %24 : vector<8x64xf32>
    %cst_23 = arith.constant 0.000000e+00 : f32
    %26 = vector.broadcast %cst_23 : f32 to vector<8x64xf32>
    %c0_24 = arith.constant 0 : index
    %c0_25 = arith.constant 0 : index
    %27 = vector.load %arg2[%c0_24, %c0_25] : memref<10x176xf32, #tpu.memory_space<vmem>>, vector<8x176xf32>
    %c0_26 = arith.constant 0 : index
    %c0_27 = arith.constant 0 : index
    %c0_28 = arith.constant 0 : index
    %28 = vector.load %arg3[%c0_26, %c0_27, %c0_28] : memref<4x176x64xf32, #tpu.memory_space<vmem>>, vector<1x176x64xf32>
    %29 = vector.shape_cast %28 : vector<1x176x64xf32> to vector<176x64xf32>
    %cst_29 = arith.constant dense<0.000000e+00> : vector<8x64xf32>
    %30 = tpu.matmul %27, %29, %cst_29 {dimension_numbers = #tpu.dot_dimension_numbers<[1], [0], [0], [1], [0, 0, 1, 1], [], []>} : vector<8x176xf32>, vector<176x64xf32>, vector<8x64xf32> -> vector<8x64xf32>
    %31 = arith.addf %26, %30 : vector<8x64xf32>
    %c2_30 = arith.constant 2 : index
    %c0_31 = arith.constant 0 : index
    %32 = vector.load %arg1[%c2_30, %c0_31] : memref<12x176xf32, #tpu.memory_space<vmem>>, vector<8x176xf32>
    %c1_32 = arith.constant 1 : index
    %c0_33 = arith.constant 0 : index
    %c0_34 = arith.constant 0 : index
    %33 = vector.load %arg3[%c1_32, %c0_33, %c0_34] : memref<4x176x64xf32, #tpu.memory_space<vmem>>, vector<1x176x64xf32>
    %34 = vector.shape_cast %33 : vector<1x176x64xf32> to vector<176x64xf32>
    %cst_35 = arith.constant dense<0.000000e+00> : vector<8x64xf32>
    %35 = tpu.matmul %32, %34, %cst_35 {dimension_numbers = #tpu.dot_dimension_numbers<[1], [0], [0], [1], [0, 0, 1, 1], [], []>} : vector<8x176xf32>, vector<176x64xf32>, vector<8x64xf32> -> vector<8x64xf32>
    %36 = arith.addf %31, %35 : vector<8x64xf32>
    %c2_36 = arith.constant 2 : index
    %c0_37 = arith.constant 0 : index
    %37 = vector.load %arg2[%c2_36, %c0_37] : memref<10x176xf32, #tpu.memory_space<vmem>>, vector<8x176xf32>
    %c2_38 = arith.constant 2 : index
    %c0_39 = arith.constant 0 : index
    %c0_40 = arith.constant 0 : index
    %38 = vector.load %arg3[%c2_38, %c0_39, %c0_40] : memref<4x176x64xf32, #tpu.memory_space<vmem>>, vector<1x176x64xf32>
    %39 = vector.shape_cast %38 : vector<1x176x64xf32> to vector<176x64xf32>
    %cst_41 = arith.constant dense<0.000000e+00> : vector<8x64xf32>
    %40 = tpu.matmul %37, %39, %cst_41 {dimension_numbers = #tpu.dot_dimension_numbers<[1], [0], [0], [1], [0, 0, 1, 1], [], []>} : vector<8x176xf32>, vector<176x64xf32>, vector<8x64xf32> -> vector<8x64xf32>
    %41 = arith.addf %36, %40 : vector<8x64xf32>
    %c4 = arith.constant 4 : index
    %c0_42 = arith.constant 0 : index
    %42 = vector.load %arg1[%c4, %c0_42] : memref<12x176xf32, #tpu.memory_space<vmem>>, vector<8x176xf32>
    %c3_43 = arith.constant 3 : index
    %c0_44 = arith.constant 0 : index
    %c0_45 = arith.constant 0 : index
    %43 = vector.load %arg3[%c3_43, %c0_44, %c0_45] : memref<4x176x64xf32, #tpu.memory_space<vmem>>, vector<1x176x64xf32>
    %44 = vector.shape_cast %43 : vector<1x176x64xf32> to vector<176x64xf32>
    %cst_46 = arith.constant dense<0.000000e+00> : vector<8x64xf32>
    %45 = tpu.matmul %42, %44, %cst_46 {dimension_numbers = #tpu.dot_dimension_numbers<[1], [0], [0], [1], [0, 0, 1, 1], [], []>} : vector<8x176xf32>, vector<176x64xf32>, vector<8x64xf32> -> vector<8x64xf32>
    %46 = arith.addf %41, %45 : vector<8x64xf32>
    %c0_47 = arith.constant 0 : index
    %c0_48 = arith.constant 0 : index
    %47 = vector.load %arg4[%c0_47, %c0_48] : memref<1x64xf32, #tpu.memory_space<vmem>>, vector<1x64xf32>
    %48 = vector.broadcast %47 : vector<1x64xf32> to vector<8x64xf32>
    %49 = arith.addf %46, %48 : vector<8x64xf32>
    %cst_49 = arith.constant 0.000000e+00 : f32
    %50 = vector.broadcast %cst_49 : f32 to vector<8x64xf32>
    %51 = arith.maximumf %49, %50 : vector<8x64xf32>
    %cst_50 = arith.constant 0.000000e+00 : f32
    %52 = vector.broadcast %cst_50 : f32 to vector<2x64xf32>
    %c0_51 = arith.constant 0 : index
    %c0_52 = arith.constant 0 : index
    %c0_53 = arith.constant 0 : index
    %53 = vector.load %arg12[%c0_51, %c0_52, %c0_53] : memref<2x10x64xf32, #tpu.memory_space<vmem>>, vector<1x2x64xf32>
    %54 = vector.shape_cast %53 : vector<1x2x64xf32> to vector<2x64xf32>
    %55 = vector.shape_cast %52 : vector<2x64xf32> to vector<1x2x64xf32>
    tpu.vector_store %arg12[%c0_51, %c0_52, %c0_53], %55 {strides = array<i32>} : memref<2x10x64xf32, #tpu.memory_space<vmem>>, vector<1x2x64xf32>,
    %c0_54 = arith.constant 0 : index
    %c2_55 = arith.constant 2 : index
    %c0_56 = arith.constant 0 : index
    %56 = vector.load %arg12[%c0_54, %c2_55, %c0_56] : memref<2x10x64xf32, #tpu.memory_space<vmem>>, vector<1x8x64xf32>
    %57 = vector.shape_cast %56 : vector<1x8x64xf32> to vector<8x64xf32>
    %58 = vector.shape_cast %51 : vector<8x64xf32> to vector<1x8x64xf32>
    tpu.vector_store %arg12[%c0_54, %c2_55, %c0_56], %58 {strides = array<i32>} : memref<2x10x64xf32, #tpu.memory_space<vmem>>, vector<1x8x64xf32>,
    %c1_57 = arith.constant 1 : index
    %c0_58 = arith.constant 0 : index
    %c0_59 = arith.constant 0 : index
    %59 = vector.load %arg12[%c1_57, %c0_58, %c0_59] : memref<2x10x64xf32, #tpu.memory_space<vmem>>, vector<1x8x64xf32>
    %60 = vector.shape_cast %59 : vector<1x8x64xf32> to vector<8x64xf32>
    %61 = vector.shape_cast %25 : vector<8x64xf32> to vector<1x8x64xf32>
    tpu.vector_store %arg12[%c1_57, %c0_58, %c0_59], %61 {strides = array<i32>} : memref<2x10x64xf32, #tpu.memory_space<vmem>>, vector<1x8x64xf32>,
    %c1_60 = arith.constant 1 : index
    %c8 = arith.constant 8 : index
    %c0_61 = arith.constant 0 : index
    %62 = vector.load %arg12[%c1_60, %c8, %c0_61] : memref<2x10x64xf32, #tpu.memory_space<vmem>>, vector<1x2x64xf32>
    %63 = vector.shape_cast %62 : vector<1x2x64xf32> to vector<2x64xf32>
    %64 = vector.shape_cast %52 : vector<2x64xf32> to vector<1x2x64xf32>
    tpu.vector_store %arg12[%c1_60, %c8, %c0_61], %64 {strides = array<i32>} : memref<2x10x64xf32, #tpu.memory_space<vmem>>, vector<1x2x64xf32>,
    %cst_62 = arith.constant 0.000000e+00 : f32
    %65 = vector.broadcast %cst_62 : f32 to vector<8x64xf32>
    %c0_63 = arith.constant 0 : index
    %c0_64 = arith.constant 0 : index
    %c0_65 = arith.constant 0 : index
    %66 = vector.load %arg12[%c0_63, %c0_64, %c0_65] : memref<2x10x64xf32, #tpu.memory_space<vmem>>, vector<1x8x64xf32>
    %67 = vector.shape_cast %66 : vector<1x8x64xf32> to vector<8x64xf32>
    %c0_66 = arith.constant 0 : index
    %c0_67 = arith.constant 0 : index
    %c0_68 = arith.constant 0 : index
    %68 = vector.load %arg5[%c0_66, %c0_67, %c0_68] : memref<3x64x64xf32, #tpu.memory_space<vmem>>, vector<1x64x64xf32>
    %69 = vector.shape_cast %68 : vector<1x64x64xf32> to vector<64x64xf32>
    %cst_69 = arith.constant dense<0.000000e+00> : vector<8x64xf32>
    %70 = tpu.matmul %67, %69, %cst_69 {dimension_numbers = #tpu.dot_dimension_numbers<[1], [0], [0], [1], [0, 0, 1, 1], [], []>} : vector<8x64xf32>, vector<64x64xf32>, vector<8x64xf32> -> vector<8x64xf32>
    %71 = arith.addf %65, %70 : vector<8x64xf32>
    %c1_70 = arith.constant 1 : index
    %c0_71 = arith.constant 0 : index
    %c0_72 = arith.constant 0 : index
    %72 = vector.load %arg12[%c1_70, %c0_71, %c0_72] : memref<2x10x64xf32, #tpu.memory_space<vmem>>, vector<1x8x64xf32>
    %73 = vector.shape_cast %72 : vector<1x8x64xf32> to vector<8x64xf32>
    %c1_73 = arith.constant 1 : index
    %c0_74 = arith.constant 0 : index
    %c0_75 = arith.constant 0 : index
    %74 = vector.load %arg5[%c1_73, %c0_74, %c0_75] : memref<3x64x64xf32, #tpu.memory_space<vmem>>, vector<1x64x64xf32>
    %75 = vector.shape_cast %74 : vector<1x64x64xf32> to vector<64x64xf32>
    %cst_76 = arith.constant dense<0.000000e+00> : vector<8x64xf32>
    %76 = tpu.matmul %73, %75, %cst_76 {dimension_numbers = #tpu.dot_dimension_numbers<[1], [0], [0], [1], [0, 0, 1, 1], [], []>} : vector<8x64xf32>, vector<64x64xf32>, vector<8x64xf32> -> vector<8x64xf32>
    %77 = arith.addf %71, %76 : vector<8x64xf32>
    %c0_77 = arith.constant 0 : index
    %c2_78 = arith.constant 2 : index
    %c0_79 = arith.constant 0 : index
    %78 = vector.load %arg12[%c0_77, %c2_78, %c0_79] : memref<2x10x64xf32, #tpu.memory_space<vmem>>, vector<1x8x64xf32>
    %79 = vector.shape_cast %78 : vector<1x8x64xf32> to vector<8x64xf32>
    %c2_80 = arith.constant 2 : index
    %c0_81 = arith.constant 0 : index
    %c0_82 = arith.constant 0 : index
    %80 = vector.load %arg5[%c2_80, %c0_81, %c0_82] : memref<3x64x64xf32, #tpu.memory_space<vmem>>, vector<1x64x64xf32>
    %81 = vector.shape_cast %80 : vector<1x64x64xf32> to vector<64x64xf32>
    %cst_83 = arith.constant dense<0.000000e+00> : vector<8x64xf32>
    %82 = tpu.matmul %79, %81, %cst_83 {dimension_numbers = #tpu.dot_dimension_numbers<[1], [0], [0], [1], [0, 0, 1, 1], [], []>} : vector<8x64xf32>, vector<64x64xf32>, vector<8x64xf32> -> vector<8x64xf32>
    %83 = arith.addf %77, %82 : vector<8x64xf32>
    %c0_84 = arith.constant 0 : index
    %c0_85 = arith.constant 0 : index
    %84 = vector.load %arg6[%c0_84, %c0_85] : memref<1x64xf32, #tpu.memory_space<vmem>>, vector<1x64xf32>
    %85 = vector.broadcast %84 : vector<1x64xf32> to vector<8x64xf32>
    %86 = arith.addf %83, %85 : vector<8x64xf32>
    %cst_86 = arith.constant 0.000000e+00 : f32
    %87 = vector.broadcast %cst_86 : f32 to vector<8x64xf32>
    %88 = arith.maximumf %86, %87 : vector<8x64xf32>
    %89 = vector.extract_strided_slice %88 {offsets = [0, 0], sizes = [2, 64], strides = [1, 1]} : vector<8x64xf32> to vector<2x64xf32>
    %90 = vector.extract_strided_slice %88 {offsets = [2, 0], sizes = [2, 64], strides = [1, 1]} : vector<8x64xf32> to vector<2x64xf32>
    %91 = arith.maximumf %89, %90 : vector<2x64xf32>
    %92 = vector.extract_strided_slice %88 {offsets = [4, 0], sizes = [2, 64], strides = [1, 1]} : vector<8x64xf32> to vector<2x64xf32>
    %93 = arith.maximumf %91, %92 : vector<2x64xf32>
    %94 = vector.extract_strided_slice %88 {offsets = [6, 0], sizes = [2, 64], strides = [1, 1]} : vector<8x64xf32> to vector<2x64xf32>
    %95 = arith.maximumf %93, %94 : vector<2x64xf32>
    %96 = vector.extract_strided_slice %95 {offsets = [0, 0], sizes = [2, 16], strides = [1, 1]} : vector<2x64xf32> to vector<2x16xf32>
    %97 = vector.extract_strided_slice %95 {offsets = [0, 16], sizes = [2, 16], strides = [1, 1]} : vector<2x64xf32> to vector<2x16xf32>
    %98 = arith.maximumf %96, %97 : vector<2x16xf32>
    %99 = vector.extract_strided_slice %95 {offsets = [0, 32], sizes = [2, 16], strides = [1, 1]} : vector<2x64xf32> to vector<2x16xf32>
    %100 = arith.maximumf %98, %99 : vector<2x16xf32>
    %101 = vector.extract_strided_slice %95 {offsets = [0, 48], sizes = [2, 16], strides = [1, 1]} : vector<2x64xf32> to vector<2x16xf32>
    %102 = arith.maximumf %100, %101 : vector<2x16xf32>
    %c0_87 = arith.constant 0 : index
    %c0_88 = arith.constant 0 : index
    %103 = vector.load %arg7[%c0_87, %c0_88] : memref<16x32xf32, #tpu.memory_space<vmem>>, vector<16x32xf32>
    %c0_89 = arith.constant 0 : index
    %c0_90 = arith.constant 0 : index
    %104 = vector.load %arg8[%c0_89, %c0_90] : memref<1x32xf32, #tpu.memory_space<vmem>>, vector<1x32xf32>
    %cst_91 = arith.constant dense<0.000000e+00> : vector<2x32xf32>
    %105 = tpu.matmul %102, %103, %cst_91 {dimension_numbers = #tpu.dot_dimension_numbers<[1], [0], [0], [1], [0, 0, 1, 1], [], []>} : vector<2x16xf32>, vector<16x32xf32>, vector<2x32xf32> -> vector<2x32xf32>
    %106 = vector.broadcast %104 : vector<1x32xf32> to vector<2x32xf32>
    %107 = arith.addf %105, %106 : vector<2x32xf32>
    %cst_92 = arith.constant 0.000000e+00 : f32
    %108 = vector.broadcast %cst_92 : f32 to vector<2x32xf32>
    %109 = arith.maximumf %107, %108 : vector<2x32xf32>
    %c0_93 = arith.constant 0 : index
    %c0_94 = arith.constant 0 : index
    %110 = vector.load %arg9[%c0_93, %c0_94] : memref<32x10xf32, #tpu.memory_space<vmem>>, vector<32x10xf32>
    %c0_95 = arith.constant 0 : index
    %c0_96 = arith.constant 0 : index
    %111 = vector.load %arg10[%c0_95, %c0_96] : memref<1x10xf32, #tpu.memory_space<vmem>>, vector<1x10xf32>
    %cst_97 = arith.constant dense<0.000000e+00> : vector<2x10xf32>
    %112 = tpu.matmul %109, %110, %cst_97 {dimension_numbers = #tpu.dot_dimension_numbers<[1], [0], [0], [1], [0, 0, 1, 1], [], []>} : vector<2x32xf32>, vector<32x10xf32>, vector<2x10xf32> -> vector<2x10xf32>
    %113 = vector.broadcast %111 : vector<1x10xf32> to vector<2x10xf32>
    %114 = arith.addf %112, %113 : vector<2x10xf32>
    %cst_98 = arith.constant dense<0xFF800000> : vector<2xf32>
    %115 = vector.multi_reduction <maximumf>, %114, %cst_98 [1] : vector<2x10xf32> to vector<2xf32>
    %116 = vector.shape_cast %115 : vector<2xf32> to vector<2x1xf32>
    %117 = vector.broadcast %116 : vector<2x1xf32> to vector<2x10xf32>
    %118 = arith.subf %114, %117 : vector<2x10xf32>
    %119 = math.exp %118 : vector<2x10xf32>
    %cst_99 = arith.constant dense<0.000000e+00> : vector<2xf32>
    %120 = vector.multi_reduction <add>, %119, %cst_99 [1] : vector<2x10xf32> to vector<2xf32>
    %121 = vector.shape_cast %120 : vector<2xf32> to vector<2x1xf32>
    %122 = vector.broadcast %121 : vector<2x1xf32> to vector<2x10xf32>
    %123 = arith.divf %119, %122 : vector<2x10xf32>
    %c0_100 = arith.constant 0 : index
    %c0_101 = arith.constant 0 : index
    %124 = vector.load %arg11[%c0_100, %c0_101] : memref<2x10xf32, #tpu.memory_space<vmem>>, vector<2x10xf32>
    tpu.vector_store %arg11[%c0_100, %c0_101], %123 {strides = array<i32>} : memref<2x10xf32, #tpu.memory_space<vmem>>, vector<2x10xf32>,
    return
  }
  func.func @transform_0(%arg0: i32) -> (i32, i32) {
    %c0_i32 = arith.constant 0 : i32
    %c0_i32_0 = arith.constant 0 : i32
    %c0_i32_1 = arith.constant 0 : i32
    return %c0_i32, %c0_i32_0 : i32, i32
  }
  func.func @transform_1(%arg0: i32) -> (i32, i32) {
    %c0_i32 = arith.constant 0 : i32
    %c0_i32_0 = arith.constant 0 : i32
    %c0_i32_1 = arith.constant 0 : i32
    return %c0_i32, %c0_i32_0 : i32, i32
  }
  func.func @transform_2(%arg0: i32) -> (i32, i32, i32) {
    %c0_i32 = arith.constant 0 : i32
    %c0_i32_0 = arith.constant 0 : i32
    %c0_i32_1 = arith.constant 0 : i32
    %c0_i32_2 = arith.constant 0 : i32
    return %c0_i32, %c0_i32_0, %c0_i32_1 : i32, i32, i32
  }
  func.func @transform_3(%arg0: i32) -> (i32, i32) {
    %c0_i32 = arith.constant 0 : i32
    %c0_i32_0 = arith.constant 0 : i32
    %c0_i32_1 = arith.constant 0 : i32
    return %c0_i32, %c0_i32_0 : i32, i32
  }
  func.func @transform_4(%arg0: i32) -> (i32, i32, i32) {
    %c0_i32 = arith.constant 0 : i32
    %c0_i32_0 = arith.constant 0 : i32
    %c0_i32_1 = arith.constant 0 : i32
    %c0_i32_2 = arith.constant 0 : i32
    return %c0_i32, %c0_i32_0, %c0_i32_1 : i32, i32, i32
  }
  func.func @transform_5(%arg0: i32) -> (i32, i32) {
    %c0_i32 = arith.constant 0 : i32
    %c0_i32_0 = arith.constant 0 : i32
    %c0_i32_1 = arith.constant 0 : i32
    return %c0_i32, %c0_i32_0 : i32, i32
  }
  func.func @transform_6(%arg0: i32) -> (i32, i32) {
    %c0_i32 = arith.constant 0 : i32
    %c0_i32_0 = arith.constant 0 : i32
    %c0_i32_1 = arith.constant 0 : i32
    return %c0_i32, %c0_i32_0 : i32, i32
  }
  func.func @transform_7(%arg0: i32) -> (i32, i32) {
    %c0_i32 = arith.constant 0 : i32
    %c0_i32_0 = arith.constant 0 : i32
    %c0_i32_1 = arith.constant 0 : i32
    return %c0_i32, %c0_i32_0 : i32, i32
  }
  func.func @transform_8(%arg0: i32) -> (i32, i32) {
    %c0_i32 = arith.constant 0 : i32
    %c0_i32_0 = arith.constant 0 : i32
    %c0_i32_1 = arith.constant 0 : i32
    return %c0_i32, %c0_i32_0 : i32, i32
  }
  func.func @transform_9(%arg0: i32) -> (i32, i32) {
    %c0_i32 = arith.constant 0 : i32
    %c0_i32_0 = arith.constant 0 : i32
    %c0_i32_1 = arith.constant 0 : i32
    return %c0_i32, %c0_i32_0 : i32, i32
  }
  func.func @transform_10(%arg0: i32) -> (i32, i32) {
    %c0_i32 = arith.constant 0 : i32
    %c0_i32_0 = arith.constant 0 : i32
    %c0_i32_1 = arith.constant 0 : i32
    return %c0_i32, %c0_i32_0 : i32, i32
  }
}

</mosaic_0001>

<bundles_post_ra>
// kernel: convnet_forward.1
= control target key start
LH: loop header
LB: loop body
LE: loop exit
PB: predicated region body
PF: predicated region fallthrough
CT: control target
= control target key end

     0   :  { %vm85_vm0 = vcmask 392192   ;;  %vm203_vm1 = vcmask 1045504   ;;  %s1768_s0 = inlined_call_operand.vmem [shape: f32[12,176], index: 0, kind: input, shape index: {}]   ;;  %s1769_s1 = inlined_call_operand.vmem [shape: f32[10,176], index: 1, kind: input, shape index: {}]   ;;  %s1770_s2 = inlined_call_operand.vmem [shape: f32[4,176,64], index: 2, kind: input, shape index: {}]   ;;  %s1771_s3 = inlined_call_operand.vmem [shape: f32[1,64], index: 3, kind: input, shape index: {}]   ;;  %s1772_s4 = inlined_call_operand.vmem [shape: f32[3,64,64], index: 4, kind: input, shape index: {}]   ;;  %s1773_s5 = inlined_call_operand.vmem [shape: f32[1,64], index: 5, kind: input, shape index: {}]   ;;  %s1774_s6 = inlined_call_operand.vmem [shape: f32[16,32], index: 6, kind: input, shape index: {}]   ;;  %s1775_s7 = inlined_call_operand.vmem [shape: f32[1,32], index: 7, kind: input, shape index: {}]   ;;  %s1776_s8 = inlined_call_operand.vmem [shape: f32[32,10], index: 8, kind: input, shape index: {}]   ;;  %s1777_s9 = inlined_call_operand.vmem [shape: f32[1,10], index: 9, kind: input, shape index: {}]   ;;  %s1778_s10 = inlined_call_operand.hbm [shape: f32[2,10], index: 10, kind: output, shape index: {}]  }
   0x1   :  { %v960_v0 = vld [vmem:[%s1770_s2 + $0x128] sm:$0xff]  ;;  %v965_v1 = vld [vmem:[%s1770_s2 + $0x158] sm:$0xff]  ;;  %v982_v4 = vld [vmem:[%s1770_s2 + $0x120] sm:$0xff] }
   0x2   :  { %v970_v2 = vld [vmem:[%s1770_s2 + $0x78] sm:$0xff]  ;;  %89 = vmatpush.msra.mxu0 %v960_v0  ;;  %119 = vmatpush.msra.mxu1 %v965_v1  ;;  %v977_v3 = vld [vmem:[%s1770_s2 + $0xa8] sm:$0xff]  ;;  %v987_v5 = vld [vmem:[%s1770_s2 + $0x150] sm:$0xff] }
   0x3   :  { %132 = vmatpush.msra.mxu2 %v970_v2  ;;  %162 = vmatpush.msra.mxu3 %v977_v3  ;;  %v994_v6 = vld [vmem:[%s1770_s2 + $0x70] sm:$0xff]  ;;  %v999_v7 = vld [vmem:[%s1770_s2 + $0xa0] sm:$0xff]  ;;  %v1004_v8 = vld [vmem:[%s1770_s2 + $0x118] sm:$0xff] }
   0x4   :  { %90 = vmatpush.msra.mxu0 %v982_v4  ;;  %120 = vmatpush.msra.mxu1 %v987_v5  ;;  %v1011_v9 = vld [vmem:[%s1770_s2 + $0x148] sm:$0xff]  ;;  %v1021_v11 = vld [vmem:[%s1770_s2 + $0x98] sm:$0xff]  ;;  %v1028_v12 = vld [vmem:[%s1770_s2 + $0x110] sm:$0xff] }
   0x5   :  { %v1016_v10 = vld [vmem:[%s1770_s2 + $0x68] sm:$0xff]  ;;  %133 = vmatpush.msra.mxu2 %v994_v6  ;;  %163 = vmatpush.msra.mxu3 %v999_v7  ;;  %v1033_v13 = vld [vmem:[%s1770_s2 + $0x140] sm:$0xff]  ;;  %v1045_v15 = vld [vmem:[%s1770_s2 + $0x90] sm:$0xff] }
   0x6   :  { %91 = vmatpush.msra.mxu0 %v1004_v8  ;;  %121 = vmatpush.msra.mxu1 %v1011_v9  ;;  %v1040_v14 = vld [vmem:[%s1770_s2 + $0x60] sm:$0xff]  ;;  %v1052_v16 = vld [vmem:[%s1770_s2 + $0x108] sm:$0xff]  ;;  %v1057_v17 = vld [vmem:[%s1770_s2 + $0x138] sm:$0xff] }
   0x7   :  { %134 = vmatpush.msra.mxu2 %v1016_v10  ;;  %164 = vmatpush.msra.mxu3 %v1021_v11  ;;  %v1064_v18 = vld [vmem:[%s1770_s2 + $0x58] sm:$0xff]  ;;  %v1069_v19 = vld [vmem:[%s1770_s2 + $0x88] sm:$0xff]  ;;  %v1076_v20 = vld [vmem:[%s1770_s2 + $0x100] sm:$0xff] }
   0x8   :  { %92 = vmatpush.msra.mxu0 %v1028_v12  ;;  %122 = vmatpush.msra.mxu1 %v1033_v13  ;;  %v1081_v21 = vld [vmem:[%s1770_s2 + $0x130] sm:$0xff]  ;;  %v1093_v23 = vld [vmem:[%s1770_s2 + $0x80] sm:$0xff]  ;;  %v1100_v24 = vld [vmem:[%s1770_s2 + $0x1d8] sm:$0xff] }
   0x9   :  { %135 = vmatpush.msra.mxu2 %v1040_v14  ;;  %165 = vmatpush.msra.mxu3 %v1045_v15  ;;  %v1088_v22 = vld [vmem:[%s1770_s2 + $0x50] sm:$0xff]  ;;  %v1105_v25 = vld [vmem:[%s1770_s2 + $0x208] sm:$0xff]  ;;  %v1112_v26 = vld [vmem:[%s1770_s2 + $0xf8] sm:$0xff] }
   0xa   :  { %93 = vmatpush.msra.mxu0 %v1052_v16  ;;  %123 = vmatpush.msra.mxu1 %v1057_v17  ;;  %v1117_v27 = vld [vmem:[%s1770_s2 + $0x48] sm:$0xff]  ;;  %v1124_v28 = vld [vmem:[%s1770_s2 + $0x1d0] sm:$0xff]  ;;  %v1129_v29 = vld [vmem:[%s1770_s2 + $0x200] sm:$0xff] }
   0xb   :  { %136 = vmatpush.msra.mxu2 %v1064_v18  ;;  %166 = vmatpush.msra.mxu3 %v1069_v19  ;;  %1802 = vst [vmem:[#allocation6_spill] sm:$0xff] %v1129_v29  ;;  %v1136_v30 = vld [vmem:[%s1770_s2 + $0xf0] sm:$0xff]  ;;  %v1141_v31 = vld [vmem:[%s1770_s2 + $0x40] sm:$0xff]  ;;  %v1148_v32 = vld [vmem:[%s1770_s2 + $0x1c8] sm:$0xff] }
   0xc   :  { %94 = vmatpush.msra.mxu0 %v1076_v20  ;;  %124 = vmatpush.msra.mxu1 %v1081_v21  ;;  %v1153_v33 = vld [vmem:[%s1770_s2 + $0x1f8] sm:$0xff]  ;;  %v1160_v34 = vld [vmem:[%s1770_s2 + $0xe8] sm:$0xff]  ;;  %v1172_v36 = vld [vmem:[%s1770_s2 + $0x1c0] sm:$0xff] }
   0xd   :  { %137 = vmatpush.msra.mxu2 %v1088_v22  ;;  %167 = vmatpush.msra.mxu3 %v1093_v23  ;;  %1803 = vst [vmem:[#allocation7_spill] sm:$0xff] %v1153_v33  ;;  %v1165_v35 = vld [vmem:[%s1770_s2 + $0x38] sm:$0xff]  ;;  %v1177_v37 = vld [vmem:[%s1770_s2 + $0x1f0] sm:$0xff]  ;;  %v1184_v38 = vld [vmem:[%s1770_s2 + $0xe0] sm:$0xff] }
   0xe   :  { %213 = vmatpush.msrb.mxu1 %v1100_v24  ;;  %95 = vmatpush.msra.mxu0 %v1112_v26  ;;  %1804 = vst [vmem:[#allocation8_spill] sm:$0xff] %v1177_v37  ;;  %v1189_v39 = vld [vmem:[%s1770_s2 + $0x30] sm:$0xff]  ;;  %v1196_v40 = vld [vmem:[%s1770_s2 + $0x1b8] sm:$0xff]  ;;  %v1201_v41 = vld [vmem:[%s1770_s2 + $0x1e8] sm:$0xff] }
   0xf   :  { %243 = vmatpush.msrb.mxu3 %v1105_v25  ;;  %138 = vmatpush.msra.mxu2 %v1117_v27  ;;  %1805 = vst [vmem:[#allocation9_spill] sm:$0xff] %v1201_v41  ;;  %v1208_v42 = vld [vmem:[%s1770_s2 + $0xd8] sm:$0xff]  ;;  %v1213_v43 = vld [vmem:[%s1770_s2 + $0x28] sm:$0xff]  ;;  %v1220_v44 = vld [vmem:[%s1770_s2 + $0x1b0] sm:$0xff] }
  0x10   :  { %214 = vmatpush.msrb.mxu1 %v1124_v28  ;;  %96 = vmatpush.msra.mxu0 %v1136_v30  ;;  %v1225_v45 = vld [vmem:[%s1770_s2 + $0x1e0] sm:$0xff]  ;;  %v1232_v46 = vld [vmem:[%s1770_s2 + $0xd0] sm:$0xff]  ;;  %v37_v48 = vld [vmem:[%s1768_s0 + $0x8] sm:$0xff] }
  0x11   :  { %244 = vmatpush.msrb.mxu3 %v1129_v29  ;;  %139 = vmatpush.msra.mxu2 %v1141_v31  ;;  %1806 = vst [vmem:[#allocation10_spill] sm:$0xff] %v1225_v45  ;;  %v1237_v47 = vld [vmem:[%s1770_s2 + $0x20] sm:$0xff]  ;;  %v1247_v49 = vld [vmem:[%s1770_s2 + $0x1a8] sm:$0xff]  ;;  %v1266_v52 = vld [vmem:[%s1770_s2 + $0x18] sm:$0xff] }
  0x12   :  { %215 = vmatpush.msrb.mxu1 %v1148_v32  ;;  %97 = vmatpush.msra.mxu0 %v1160_v34  ;;  %v1254_v50 = vld [vmem:[%s1770_s2 + $0x288] sm:$0xff]  ;;  %v1271_v53 = vld [vmem:[%s1770_s2 + $0x1a0] sm:$0xff]  ;;  %v1290_v56 = vld [vmem:[%s1770_s2 + $0x10] sm:$0xff] }
  0x13   :  { %245 = vmatpush.msrb.mxu3 %v1153_v33  ;;  %140 = vmatpush.msra.mxu2 %v1165_v35  ;;  %v1259_v51 = vld [vmem:[%s1770_s2 + $0xc8] sm:$0xff]  ;;  %1807 = vst [vmem:[#allocation11_spill] sm:$0xff] %v1271_v53  ;;  %v1278_v54 = vld [vmem:[%s1770_s2 + $0x280] sm:$0xff]  ;;  %v1295_v57 = vld [vmem:[%s1770_s2 + $0x198] sm:$0xff] }
  0x14   :  { %216 = vmatpush.msrb.mxu1 %v1172_v36  ;;  %98 = vmatpush.msra.mxu0 %v1184_v38  ;;  %v1283_v55 = vld [vmem:[%s1770_s2 + $0xc0] sm:$0xff]  ;;  %1808 = vst [vmem:[#allocation12_spill] sm:$0xff] %v1290_v56  ;;  %v1302_v58 = vld [vmem:[%s1770_s2 + $0x278] sm:$0xff]  ;;  %v1314_v60 = vld [vmem:[%s1770_s2 + $0x8] sm:$0xff] }
  0x15   :  { %246 = vmatpush.msrb.mxu3 %v1177_v37  ;;  %141 = vmatpush.msra.mxu2 %v1189_v39  ;;  %1809 = vst [vmem:[#allocation13_spill] sm:$0xff] %v1295_v57  ;;  %v1307_v59 = vld [vmem:[%s1770_s2 + $0xb8] sm:$0xff]  ;;  %v1319_v61 = vld [vmem:[%s1770_s2 + $0x190] sm:$0xff]  ;;  %v36_v37 = vld [vmem:[%s1768_s0] sm:$0xff] }
  0x16   :  { %217 = vmatpush.msrb.mxu1 %v1196_v40  ;;  %99 = vmatpush.msra.mxu0 %v1208_v42  ;;  %1810 = vst [vmem:[#allocation14_spill] sm:$0xff] %v1302_v58  ;;  %v1326_v62 = vld [vmem:[%s1770_s2 + $0x270] sm:$0xff]  ;;  %v173_v33 = vld [vmem:[%s1768_s0 + $0x8] sm:$0xfc] }
  0x17   :  { %247 = vmatpush.msrb.mxu3 %v1201_v41  ;;  %142 = vmatpush.msra.mxu2 %v1213_v43  ;;  %1811 = vst [vmem:[#allocation15_spill] sm:$0xff] %v1314_v60  ;;  %v1331_v63 = vld [vmem:[%s1770_s2 + $0xb0] sm:$0xff]  ;;  %v1348_v41 = vld [vmem:[%s1770_s2 + $0x188] sm:$0xff] }
  0x18   :  { %218 = vmatpush.msrb.mxu1 %v1220_v44  ;;  %100 = vmatpush.msra.mxu0 %v1232_v46  ;;  %1812 = vst [vmem:[#allocation16_spill] sm:$0xff] %v1319_v61  ;;  %v1388_v29 = vld [vmem:[%s1769_s1 + $0x8] sm:$0xff] }
  0x19   :  { %248 = vmatpush.msrb.mxu3 %v1225_v45  ;;  %143 = vmatpush.msra.mxu2 %v1237_v47  ;;  %1813 = vst [vmem:[#allocation17_spill] sm:$0xff] %v1326_v62  ;;  %v1343_v45 = vld [vmem:[%s1770_s2 + $0x268] sm:$0xff] }
  0x1a   :  { %786 = vmatmul.msk.f32.vlgmr.msra.gmra.mxu3 %vm85_vm0, %v37_v48  ;;  %219 = vmatpush.msrb.mxu1 %v1247_v49  ;;  %v1338_v48 = vld [vmem:[%s1770_s2] sm:$0xff]  ;;  %1815 = vst [vmem:[#allocation19_spill] sm:$0xff] %v1348_v41 }
  0x1b   :  { %294 = vmatpush.msra.mxu3 %v1254_v50  ;;  %101 = vmatpush.msra.mxu0 %v1259_v51  ;;  %1814 = vst [vmem:[#allocation18_spill] sm:$0xff] %v1338_v48 }
  0x1c   :  { %144 = vmatpush.msra.mxu2 %v1266_v52  ;;  %220 = vmatpush.msrb.mxu1 %v1271_v53 }
  0x1d   :  { %295 = vmatpush.msra.mxu3 %v1278_v54  ;;  %102 = vmatpush.msra.mxu0 %v1283_v55 }
  0x1e   :  { %145 = vmatpush.msra.mxu2 %v1290_v56  ;;  %221 = vmatpush.msrb.mxu1 %v1295_v57  ;;  %v175_v57 = vld [vmem:[%s1768_s0 + $0x18] sm:$0x3] }
  0x1f   :  { %296 = vmatpush.msra.mxu3 %v1302_v58  ;;  %103 = vmatpush.msra.mxu0 %v1307_v59  ;;  %v1376_v58 = vld [vmem:[%s1770_s2 + $0x180] sm:$0xff]  ;;  %v1393_v56 = vld [vmem:[%s1770_s2 + $0x258] sm:$0xff] }
  0x20   :  { %146 = vmatpush.msra.mxu2 %v1314_v60  ;;  %222 = vmatpush.msrb.mxu1 %v1319_v61  ;;  %v1366_v61 = vld [vmem:[%s1770_s2 + $0x2b8] sm:$0xff]  ;;  %v1371_v60 = vld [vmem:[%s1770_s2 + $0x260] sm:$0xff]  ;;  %1817 = vst [vmem:[#allocation21_spill] sm:$0xff] %v1376_v58 }
  0x21   :  { %297 = vmatpush.msra.mxu3 %v1326_v62  ;;  %104 = vmatpush.msra.mxu0 %v1331_v63  ;;  %1816 = vst [vmem:[#allocation20_spill] sm:$0xff] %v1366_v61  ;;  %v1383_v62 = vld [vmem:[%s1770_s2 + $0x2b0] sm:$0xff] }
  0x22   :  { %147 = vmatpush.msra.mxu2 %v1338_v48  ;;  %223 = vmatpush.msrb.mxu1 %v1348_v41  ;;  %1818 = vst [vmem:[#allocation22_spill] sm:$0xff] %v1383_v62  ;;  %v207_v41 = vrot.slane %v173_v33, 2  ;;  %v208_v48 = vrot.slane %v175_v57, 2 }
  0x23   :  { %1819 = vst [vmem:[#allocation23_spill] sm:$0xff] %v1393_v56  ;;  %298 = vmatpush.msra.mxu3 %v1343_v45  ;;  %148 = vmatmul.f32.vlgmr.msra.gmra.mxu2 %v36_v37 }
  0x24   :  { %324 = vmatpush.msrb.mxu0 %v1366_v61  ;;  %341 = vmatpush.msrb.mxu2 %v960_v0 }
  0x25   :  { %15 = vsyncpa [#allocation4], 0  ;;  %299 = vmatpush.msra.mxu3 %v1371_v60  ;;  %224 = vmatpush.msrb.mxu1 %v1376_v58  ;;  %v1403_v53 = vld [vmem:[%s1769_s1] sm:$0xff]  ;;  %v1408_v37 = vld [vmem:[%s1770_s2 + $0x178] sm:$0xff]  ;;  %vm470_vm2 = vcmask 1043456   ;;  %vm525_vm3 = vcmask 523264  }
  0x26   :  { %1820 = vst [vmem:[#allocation24_spill] sm:$0xff] %v1408_v37  ;;  %325 = vmatpush.msrb.mxu0 %v1383_v62  ;;  %342 = vmatpush.msrb.mxu2 %v982_v4  ;;  %v1415_v0 = vld [vmem:[%s1770_s2 + $0x2a8] sm:$0xff]  ;;  %v172_v33 = vld [vmem:[%s1768_s0] sm:$0xfc]  ;;  %v174_v57 = vld [vmem:[%s1768_s0 + $0x10] sm:$0x3]  ;;  %v1427_v4 = vsel %vm203_vm1, %v207_v41, %v208_v48 }
  0x27   :  { %1821 = vst [vmem:[#allocation25_spill] sm:$0xff] %v1415_v0  ;;  %785 = vmatmul.msk.f32.vlgmr.msra.gmra.mxu1 %vm85_vm0, %v1388_v29  ;;  %300 = vmatpush.msra.mxu3 %v1393_v56  ;;  %v1432_v62 = vld [vmem:[%s1770_s2 + $0x170] sm:$0xff]  ;;  %v1444_v56 = vld [vmem:[%s1770_s2 + $0x2a0] sm:$0xff]  ;;  %v1451_v41 = vld [vmem:[%s1770_s2 + $0x168] sm:$0xff]  ;;  %v204_v48 = vrot.slane %v172_v33, 2  ;;  %vm523_vm4 = vcmask 517120  }
  0x28   :  { %105 = vmatmul.f32.vlgmr.msra.gmra.mxu0 %v1403_v53  ;;  %225 = vmatpush.msrb.mxu1 %v1408_v37  ;;  %v1439_v58 = vld [vmem:[%s1770_s2 + $0x250] sm:$0xff]  ;;  %1822 = vst [vmem:[#allocation26_spill] sm:$0xff] %v1444_v56  ;;  %v205_v37 = vrot.slane %v174_v57, 2  ;;  %v1459_v61 = vld [vmem:[%s1770_s2 + $0x248] sm:$0xff]  ;;  %v1471_v33 = vld [vmem:[%s1770_s2 + $0x160] sm:$0xff]  ;;  %s898_s21 = smov 80  }
  0x29   :  { %326 = vmatpush.msrb.mxu0 %v1415_v0  ;;  %343 = vmatpush.msrb.mxu2 %v1004_v8  ;;  %v1464_v8 = vld [vmem:[%s1770_s2 + $0x298] sm:$0xff]  ;;  %v1478_v57 = vld [vmem:[%s1770_s2 + $0x240] sm:$0xff]  ;;  %v1483_v0 = vld [vmem:[%s1770_s2 + $0x290] sm:$0xff]  ;;  %s899_s22 = smov 112   ;;  %s900_s23 = smov 96   ;;  %vm664_vm5 = vcmask 130048  }
  0x2a   :  { %809 = vmatmul.msk.f32.vlgmr.msrb.gmra.mxu3 %vm85_vm0, %v1427_v4  ;;  %226 = vmatpush.msrb.mxu1 %v1432_v62  ;;  %1823 = vst [vmem:[#allocation27_spill] sm:$0xff] %v1483_v0  ;;  %vm697_vm6 = vcmask 261120   ;;  %vm721_vm7 = vcmask 74752   ;;  %s754_s17 = sshll.u32 %s1778_s10, 4  ;;  %s755_s17 = int_to_ptr.hbm [resolvable:$true] %s754_s17 }
  0x2b   :  { %301 = vmatpush.msra.mxu3 %v1439_v58  ;;  %327 = vmatpush.msrb.mxu0 %v1444_v56  ;;  %v1488_v56 = vsel %vm203_vm1, %v204_v48, %v205_v37  ;;  %v1504_v37 = vld [vmem:[%s1770_s2 + $0x230] sm:$0xff] }
  0x2c   :  { %344 = vmatpush.msrb.mxu2 %v1028_v12  ;;  %227 = vmatpush.msrb.mxu1 %v1451_v41  ;;  %v1495_v12 = vld [vmem:[%s1770_s2 + $0x238] sm:$0xff]  ;;  %1824 = vst [vmem:[#allocation28_spill] sm:$0xff] %v1504_v37  ;;  %v256_v48 = vld [vmem:[%s1769_s1 + $0x10] sm:$0x3] }
  0x2d   :  { %302 = vmatpush.msra.mxu3 %v1459_v61  ;;  %328 = vmatpush.msrb.mxu0 %v1464_v8 }
  0x2e   :  { %345 = vmatpush.msrb.mxu2 %v1052_v16  ;;  %228 = vmatpush.msrb.mxu1 %v1471_v33  ;;  %v1513_v16 = vld [vmem:[%s1770_s2 + $0x228] sm:$0xff] }
  0x2f   :  { %303 = vmatpush.msra.mxu3 %v1478_v57  ;;  %329 = vmatpush.msrb.mxu0 %v1483_v0 }
  0x30   :  { %346 = vmatpush.msrb.mxu2 %v1076_v20  ;;  %229 = vmatmul.f32.vlgmr.msrb.gmra.mxu1 %v1488_v56  ;;  %v254_v20 = vld [vmem:[%s1769_s1] sm:$0xfc] }
  0x31   :  { %304 = vmatpush.msra.mxu3 %v1495_v12  ;;  %371 = vmatpush.msra.mxu0 %v965_v1  ;;  %v255_v1 = vld [vmem:[%s1769_s1 + $0x8] sm:$0xfc] }
  0x32   :  { %381 = vmatpush.msra.mxu1 %v970_v2  ;;  %347 = vmatpush.msrb.mxu2 %v1112_v26  ;;  %v257_v2 = vld [vmem:[%s1769_s1 + $0x18] sm:$0x3]  ;;  %v1534_v26 = vld [vmem:[%s1770_s2 + $0x220] sm:$0xff] }
  0x33   :  { %305 = vmatpush.msra.mxu3 %v1504_v37  ;;  %372 = vmatpush.msra.mxu0 %v987_v5  ;;  %v285_v5 = vrot.slane %v254_v20, 2  ;;  %v286_v37 = vrot.slane %v256_v48, 2  ;;  %v289_v0 = vrot.slane %v257_v2, 2 }
  0x34   :  { %382 = vmatpush.msra.mxu1 %v994_v6  ;;  %348 = vmatpush.msrb.mxu2 %v1136_v30  ;;  %v1543_v6 = vld [vmem:[%s1770_s2 + $0x218] sm:$0xff]  ;;  %v288_v30 = vrot.slane %v255_v1, 2  ;;  %v863_v1 = vld [vmem:[%s1771_s3] ss:$0 sm:$0xff] }
  0x35   :  { %306 = vmatpush.msra.mxu3 %v1513_v16  ;;  %373 = vmatpush.msra.mxu0 %v1011_v9  ;;  %v1552_v9 = vld [vmem:[%s1770_s2 + $0x210] sm:$0xff] }
  0x36   :  { %383 = vmatpush.msra.mxu1 %v1016_v10  ;;  %349 = vmatpush.msrb.mxu2 %v1160_v34  ;;  %v1557_v10 = vsel %vm203_vm1, %v285_v5, %v286_v37  ;;  %v465_v34 = vld [vmem:[%s1768_s0 + $0x18] sm:$0xf] }
  0x37   :  { %307 = vmatpush.msra.mxu3 %v1534_v26  ;;  %374 = vmatpush.msra.mxu0 %v1033_v13  ;;  %v290_v13 = vsel %vm203_vm1, %v288_v30, %v289_v0  ;;  %v854_v30 = vld [vmem:[%s1772_s4 + $0xb8] sm:$0xff] }
  0x38   :  { %384 = vmatpush.msra.mxu1 %v1040_v14  ;;  %350 = vmatpush.msrb.mxu2 %v1184_v38  ;;  %v1828_v14 = vld [vmem:[#allocation14_spill] sm:$0xff]  ;;  %v1844_v38 = vld [vmem:[#allocation25_spill] sm:$0xff] }
  0x39   :  { %308 = vmatpush.msra.mxu3 %v1543_v6  ;;  %375 = vmatpush.msra.mxu0 %v1057_v17  ;;  %v1830_v17 = vld [vmem:[#allocation15_spill] sm:$0xff] }
  0x3a   :  { %385 = vmatpush.msra.mxu1 %v1064_v18  ;;  %351 = vmatpush.msrb.mxu2 %v1208_v42  ;;  %v1831_v18 = vld [vmem:[#allocation7_spill] sm:$0xff]  ;;  %v1845_v42 = vld [vmem:[#allocation26_spill] sm:$0xff] }
  0x3b   :  { %309 = vmatpush.msra.mxu3 %v1552_v9  ;;  %376 = vmatpush.msra.mxu0 %v1081_v21  ;;  %v1833_v21 = vld [vmem:[#allocation16_spill] sm:$0xff] }
  0x3c   :  { %386 = vmatpush.msra.mxu1 %v1088_v22  ;;  %310 = vmatmul.f32.vlgmr.msra.gmra.mxu3 %v1557_v10  ;;  %v1834_v22 = vld [vmem:[#allocation18_spill] sm:$0xff] }
  0x3d   :  { %832 = vmatmul.msk.f32.vlgmr.msrb.gmra.mxu0 %vm85_vm0, %v290_v13  ;;  %352 = vmatpush.msrb.mxu2 %v1232_v46  ;;  %v464_v46 = vld [vmem:[%s1768_s0 + $0x10] sm:$0xf] }
  0x3e   :  { %411 = vmatpush.msrb.mxu0 %v977_v3  ;;  %421 = vmatpush.msrb.mxu3 %v1100_v24  ;;  %v1825_v3 = vld [vmem:[#allocation11_spill] sm:$0xff]  ;;  %v1836_v24 = vld [vmem:[#allocation8_spill] sm:$0xff] }
  0x3f   :  { %387 = vmatpush.msra.mxu1 %v1117_v27  ;;  %353 = vmatpush.msrb.mxu2 %v1259_v51  ;;  %v1838_v27 = vld [vmem:[#allocation21_spill] sm:$0xff] }
  0x40   :  { %412 = vmatpush.msrb.mxu0 %v999_v7  ;;  %422 = vmatpush.msrb.mxu3 %v1124_v28  ;;  %v1826_v7 = vld [vmem:[#allocation12_spill] sm:$0xff]  ;;  %v1839_v28 = vld [vmem:[#allocation9_spill] sm:$0xff] }
  0x41   :  { %388 = vmatpush.msra.mxu1 %v1141_v31  ;;  %354 = vmatpush.msrb.mxu2 %v1283_v55  ;;  %v1840_v31 = vld [vmem:[#allocation23_spill] sm:$0xff]  ;;  %v841_v55 = vld [vmem:[%s1772_s4 + $0x60] sm:$0xff] }
  0x42   :  { %413 = vmatpush.msrb.mxu0 %v1021_v11  ;;  %423 = vmatpush.msrb.mxu3 %v1148_v32  ;;  %v1827_v11 = vld [vmem:[#allocation6_spill] sm:$0xff] }
  0x43   :  { %389 = vmatpush.msra.mxu1 %v1165_v35  ;;  %355 = vmatpush.msrb.mxu2 %v1307_v59  ;;  %v1841_v32 = vld [vmem:[#allocation22_spill] sm:$0xff]  ;;  %v1842_v35 = vld [vmem:[#allocation24_spill] sm:$0xff] }
  0x44   :  { %414 = vmatpush.msrb.mxu0 %v1045_v15  ;;  %424 = vmatpush.msrb.mxu3 %v1172_v36  ;;  %v1829_v15 = vld [vmem:[#allocation13_spill] sm:$0xff]  ;;  %v1843_v36 = vld [vmem:[#allocation10_spill] sm:$0xff] }
  0x45   :  { %390 = vmatpush.msra.mxu1 %v1189_v39  ;;  %356 = vmatpush.msrb.mxu2 %v1331_v63 }
  0x46   :  { %415 = vmatpush.msrb.mxu0 %v1069_v19  ;;  %425 = vmatpush.msrb.mxu3 %v1196_v40  ;;  %v1832_v19 = vld [vmem:[#allocation17_spill] sm:$0xff]  ;;  %v475_v40 = vrot.slane %v465_v34, 4 }
  0x47   :  { %357 = vmatmul.f32.vlgmr.msrb.gmra.mxu2 %v1488_v56  ;;  %391 = vmatpush.msra.mxu1 %v1213_v43  ;;  %v840_v56 = vld [vmem:[%s1772_s4 + $0x58] sm:$0xff] }
  0x48   :  { %416 = vmatpush.msrb.mxu0 %v1093_v23  ;;  %426 = vmatpush.msrb.mxu3 %v1220_v44  ;;  %v1835_v23 = vld [vmem:[#allocation19_spill] sm:$0xff] }
  0x49   :  { %833 = vmatmul.msk.f32.vlgmr.msra.gmra.mxu0 %vm85_vm0, %v1427_v4  ;;  %392 = vmatpush.msra.mxu1 %v1237_v47  ;;  %v1846_v44 = vld [vmem:[#allocation27_spill] sm:$0xff]  ;;  %v1847_v47 = vld [vmem:[#allocation28_spill] sm:$0xff] }
  0x4a   :  { %480 = vmatpush.msra.mxu0 %v1254_v50  ;;  %427 = vmatpush.msrb.mxu3 %v1247_v49  ;;  %v472_v50 = vrot.slane %v464_v46, 4 }
  0x4b   :  { %393 = vmatpush.msra.mxu1 %v1266_v52  ;;  %451 = vmatpush.msra.mxu2 %v1105_v25  ;;  %v1837_v25 = vld [vmem:[#allocation20_spill] sm:$0xff] }
  0x4c   :  { %481 = vmatpush.msra.mxu0 %v1278_v54  ;;  %428 = vmatpush.msrb.mxu3 %v1825_v3  ;;  %v844_v52 = vld [vmem:[%s1772_s4 + $0x78] sm:$0xff]  ;;  %v842_v54 = vld [vmem:[%s1772_s4 + $0x68] sm:$0xff] }
  0x4d   :  { %394 = vmatpush.msra.mxu1 %v1826_v7  ;;  %452 = vmatpush.msra.mxu2 %v1827_v11  ;;  %v852_v3 = vld [vmem:[%s1772_s4 + $0xa8] sm:$0xff]  ;;  %v535_v7 = vld [vmem:[%s1772_s4 + $0x20] sm:$0xff] }
  0x4e   :  { %482 = vmatpush.msra.mxu0 %v1828_v14  ;;  %429 = vmatpush.msrb.mxu3 %v1829_v15  ;;  %v851_v11 = vld [vmem:[%s1772_s4 + $0xa0] sm:$0xff]  ;;  %v534_v15 = vld [vmem:[%s1772_s4 + $0x18] sm:$0xff] }
  0x4f   :  { %395 = vmatpush.msra.mxu1 %v1830_v17  ;;  %453 = vmatpush.msra.mxu2 %v1831_v18  ;;  %v850_v17 = vld [vmem:[%s1772_s4 + $0x98] sm:$0xff]  ;;  %v897_v18 = vmov 0.0  }
  0x50   :  { %483 = vmatpush.msra.mxu0 %v1832_v19  ;;  %430 = vmatpush.msrb.mxu3 %v1833_v21  ;;  %524 = vst.msk [vmem:[#allocation2] sm:$0x3] %vm523_vm4, %v897_v18  ;;  %v533_v19 = vld [vmem:[%s1772_s4 + $0x10] sm:$0xff] }
  0x51   :  { %396 = vmatpush.msra.mxu1 %v1834_v22  ;;  %834 = vmatmul.msk.f32.vlgmr.msrb.gmra.mxu0 %vm85_vm0, %v1388_v29  ;;  %v463_v29 = vld [vmem:[%s1768_s0 + $0x8] sm:$0xf0]  ;;  %v849_v21 = vld [vmem:[%s1772_s4 + $0x90] sm:$0xff] }
  0x52   :  { %484 = vmatpush.msra.mxu0 %v1343_v45  ;;  %397 = vmatmul.f32.vlgmr.msra.gmra.mxu1 %v1403_v53  ;;  %v474_v39 = vrot.slane %v463_v29, 4  ;;  %v462_v45 = vld [vmem:[%s1768_s0] sm:$0xf0]  ;;  %v843_v53 = vld [vmem:[%s1772_s4 + $0x70] sm:$0xff]  ;;  %v532_v22 = vld [vmem:[%s1772_s4 + $0x8] sm:$0xff] }
  0x53   :  { %431 = vmatpush.msrb.mxu3 %v1835_v23  ;;  %454 = vmatpush.msra.mxu2 %v1836_v24  ;;  %v471_v49 = vrot.slane %v462_v45, 4  ;;  %v848_v23 = vld [vmem:[%s1772_s4 + $0x88] sm:$0xff]  ;;  %v531_v24 = vld [vmem:[%s1772_s4] sm:$0xff] }
  0x54   :  { %485 = vmatpush.msra.mxu0 %v1371_v60  ;;  %510 = vmatpush.msrb.mxu1 %v1837_v25  ;;  %v476_v43 = vsel %vm470_vm2, %v474_v39, %v475_v40  ;;  %v847_v25 = vld [vmem:[%s1772_s4 + $0x80] sm:$0xff] }
  0x55   :  { %432 = vmatpush.msrb.mxu3 %v1838_v27  ;;  %455 = vmatpush.msra.mxu2 %v1839_v28  ;;  %v473_v51 = vsel %vm470_vm2, %v471_v49, %v472_v50 }
  0x56   :  { %486 = vmatpush.msra.mxu0 %v1840_v31  ;;  %511 = vmatpush.msrb.mxu1 %v1841_v32 }
  0x57   :  { %433 = vmatpush.msrb.mxu3 %v1842_v35  ;;  %456 = vmatpush.msra.mxu2 %v1843_v36 }
  0x58   :  { %487 = vmatpush.msra.mxu0 %v1439_v58  ;;  %835 = vmatmul.msk.f32.vlgmr.msra.gmra.mxu2 %vm85_vm0, %v290_v13  ;;  %v839_v58 = vld [vmem:[%s1772_s4 + $0x50] sm:$0xff]  ;;  %v536_v13 = vld [vmem:[%s1772_s4 + $0x28] sm:$0xff] }
  0x59   :  { %434 = vmatpush.msrb.mxu3 %v1432_v62  ;;  %512 = vmatpush.msrb.mxu1 %v1844_v38  ;;  %v837_v62 = vld [vmem:[%s1772_s4 + $0x40] sm:$0xff] }
  0x5a   :  { %488 = vmatpush.msra.mxu0 %v1459_v61  ;;  %560 = vmatpush.msrb.mxu2 %v844_v52  ;;  %v838_v61 = vld [vmem:[%s1772_s4 + $0x48] sm:$0xff] }
  0x5b   :  { %435 = vmatpush.msrb.mxu3 %v1451_v41  ;;  %513 = vmatpush.msrb.mxu1 %v1845_v42 }
  0x5c   :  { %489 = vmatpush.msra.mxu0 %v1478_v57  ;;  %561 = vmatpush.msrb.mxu2 %v843_v53 }
  0x5d   :  { %436 = vmatpush.msrb.mxu3 %v1471_v33  ;;  %514 = vmatpush.msrb.mxu1 %v1464_v8 }
  0x5e   :  { %437 = vmatmul.f32.vlgmr.msrb.gmra.mxu3 %v1557_v10  ;;  %490 = vmatpush.msra.mxu0 %v1495_v12  ;;  %v853_v10 = vld [vmem:[%s1772_s4 + $0xb0] sm:$0xff] }
  0x5f   :  { %515 = vmatpush.msrb.mxu1 %v1846_v44  ;;  %562 = vmatpush.msrb.mxu2 %v842_v54  ;;  %v864_v54 = vld [vmem:[%s1773_s5] ss:$0 sm:$0xff] }
  0x60   :  { %491 = vmatpush.msra.mxu0 %v1847_v47  ;;  %836 = vmatmul.msk.f32.vlgmr.msrb.gmra.mxu1 %vm85_vm0, %v476_v43 }
  0x61   :  { %563 = vmatpush.msrb.mxu2 %v841_v55  ;;  %616 = vmatpush.msra.mxu3 %v854_v30 }
  0x62   :  { %492 = vmatpush.msra.mxu0 %v1513_v16 }
  0x63   :  { %564 = vmatpush.msrb.mxu2 %v840_v56  ;;  %617 = vmatpush.msra.mxu3 %v853_v10  ;;  %v866_v10 = vld [vmem:[%s1777_s9] ss:$0 sm:$0xff] }
  0x64   :  { %493 = vmatpush.msra.mxu0 %v1534_v26 }
  0x65   :  { %565 = vmatpush.msrb.mxu2 %v839_v58  ;;  %618 = vmatpush.msra.mxu3 %v852_v3 }
  0x66   :  { %494 = vmatpush.msra.mxu0 %v1543_v6  ;;  %v538_v6 = vld [vmem:[%s1772_s4 + $0x38] sm:$0xff] }
  0x67   :  { %566 = vmatpush.msrb.mxu2 %v838_v61  ;;  %583 = vmatpush.msra.mxu1 %v538_v6 }
  0x68   :  { %495 = vmatpush.msra.mxu0 %v1552_v9  ;;  %v537_v9 = vld [vmem:[%s1772_s4 + $0x30] sm:$0xff]  ;;  %619 = vmatpush.msra.mxu3 %v851_v11 }
  0x69   :  { %496 = vmatmul.f32.vlgmr.msra.gmra.mxu0 %v473_v51  ;;  %567 = vmatpush.msrb.mxu2 %v837_v62 }
  0x6a   :  { %584 = vmatpush.msra.mxu1 %v537_v9  ;;  %620 = vmatpush.msra.mxu3 %v850_v17 }
  0x6c   :  { %585 = vmatpush.msra.mxu1 %v536_v13  ;;  %621 = vmatpush.msra.mxu3 %v849_v21 }
  0x6e   :  { %586 = vmatpush.msra.mxu1 %v535_v7  ;;  %622 = vmatpush.msra.mxu3 %v848_v23 }
  0x70   :  { %587 = vmatpush.msra.mxu1 %v534_v15  ;;  %623 = vmatpush.msra.mxu3 %v847_v25 }
  0x72   :  { %588 = vmatpush.msra.mxu1 %v533_v19 }
  0x74   :  { %589 = vmatpush.msra.mxu1 %v532_v22 }
  0x76   :  { %590 = vmatpush.msra.mxu1 %v531_v24 }
  0x9d   :  { %v169_v59 = vpop.f32.mrf.mxu3 }
  0xa4   :  { %v126_v60 = vpop.f32.mrf.mxu1 }
  0xa5   :  { %v106_v63 = vpop.f32.mrf.mxu0 }
  0xa6   :  { %v127_v0 = vadd.f32 %v126_v60, %v106_v63  ;;  %v149_v4 = vpop.f32.mrf.mxu2 }
  0xa8   :  { %v150_v33 = vadd.f32 %v149_v4, %v127_v0 }
  0xaa   :  { %v170_v12 = vadd.f32 %v169_v59, %v150_v33  ;;  %v692_v33 = vld [vmem:[%s1776_s8 + $0x18] sm:$0xff] }
  0xab   :  { %713 = vmatpush.msrb.mxu0 %v692_v33 }
  0xad   :  { %v250_v41 = vpop.f32.mrf.mxu3  ;;  %v230_v8 = vpop.f32.mrf.mxu1 }
  0xae   :  { %v251_v57 = vadd.f32 %v250_v41, %v230_v8  ;;  %v659_v41 = vld [vmem:[%s1774_s6 + $0x8] sm:$0xff]  ;;  %v658_v8 = vld [vmem:[%s1774_s6] sm:$0xff] }
  0xaf   :  { %682 = vmatpush.msra.mxu2 %v659_v41 }
  0xb0   :  { %v253_v20 = vadd.f32 %v251_v57, %v170_v12  ;;  %v691_v57 = vld [vmem:[%s1776_s8 + $0x10] sm:$0xff] }
  0xb1   :  { %683 = vmatpush.msra.mxu2 %v658_v8  ;;  %714 = vmatpush.msrb.mxu0 %v691_v57 }
  0xba   :  { %v331_v37 = vpop.f32.mrf.mxu0 }
  0xbf   :  { %v311_v16 = vpop.f32.mrf.mxu3 }
  0xc0   :  { %v332_v48 = vadd.f32 %v331_v37, %v311_v16 }
  0xc2   :  { %v334_v2 = vadd.f32 %v332_v48, %v253_v20 }
  0xc4   :  { %v339_v26 = vadd.f32 %v863_v1, %v334_v2  ;;  %v690_v2 = vld [vmem:[%s1776_s8 + $0x8] sm:$0xff] }
  0xc5   :  { %715 = vmatpush.msrb.mxu0 %v690_v2 }
  0xc6   :  { %v340_v5 = vmax.f32 %v339_v26, 0.0  ;;  %v378_v27 = vpop.f32.mrf.mxu0  ;;  %v689_v26 = vld [vmem:[%s1776_s8] sm:$0xff] }
  0xc7   :  { %716 = vmatpush.msrb.mxu0 %v689_v26 }
  0xc8   :  { %528 = vst.msk [vmem:[#allocation2 + $0x10] sm:$0xff] %vm525_vm3, %v340_v5  ;;  %v865_v5 = vld [vmem:[%s1775_s7] ss:$0 sm:$0xff]  ;;  %s901_s7 = smov [#allocation3]  }
  0xc9   :  { %s752_s8 = sshll.u32 %s901_s7, 4  ;;  %s753_s8 = int_to_ptr.vmem [resolvable:$true] %s752_s8 }
  0xca   :  { %v358_v28 = vpop.f32.mrf.mxu2 }
  0xcb   :  { %v379_v29 = vadd.f32 %v378_v27, %v358_v28 }
  0xce   :  { %v418_v32 = vpop.f32.mrf.mxu0 }
  0xcf   :  { %v539_v14 = vld [vmem:[#allocation2 + $0x10] sm:$0xff]  ;;  %v398_v31 = vpop.f32.mrf.mxu1 }
  0xd0   :  { %845 = vmatmul.msk.f32.vlgmr.msrb.gmra.mxu2 %vm525_vm3, %v539_v14  ;;  %v399_v35 = vadd.f32 %v398_v31, %v379_v29 }
  0xd2   :  { %v419_v40 = vadd.f32 %v418_v32, %v399_v35 }
  0xdb   :  { %v458_v34 = vpop.f32.mrf.mxu2 }
  0xdd   :  { %v517_v39 = vpop.f32.mrf.mxu1 }
  0xe1   :  { %v438_v36 = vpop.f32.mrf.mxu3 }
  0xe2   :  { %v459_v38 = vadd.f32 %v458_v34, %v438_v36 }
  0xe4   :  { %v461_v43 = vadd.f32 %v459_v38, %v419_v40 }
  0xe6   :  { %v497_v42 = vpop.f32.mrf.mxu0 }
  0xe7   :  { %v518_v44 = vadd.f32 %v517_v39, %v497_v42 }
  0xe9   :  { %v520_v45 = vadd.f32 %v518_v44, %v461_v43 }
  0xeb   :  { %v521_v46 = vadd.f32 %v863_v1, %v520_v45 }
  0xed   :  { %v522_v47 = vmax.f32 %v521_v46, 0.0 }
  0xef   :  { %526 = vst.msk [vmem:[#allocation2 + $0x2] sm:$0xff] %vm525_vm3, %v522_v47 }
  0xf6   :  { %v530_v49 = vld [vmem:[#allocation2] sm:$0xff] }
  0xf7   :  { %v595_v50 = vld [vmem:[#allocation2 + $0x2] sm:$0xff]  ;;  %846 = vmatmul.msk.f32.vlgmr.msra.gmra.mxu1 %vm525_vm3, %v530_v49 }
  0xf8   :  { %855 = vmatmul.msk.f32.vlgmr.msra.gmra.mxu3 %vm525_vm3, %v595_v50 }
 0x153   :  { %v569_v52 = vpop.f32.mrf.mxu2 }
 0x174   :  { %v592_v51 = vpop.f32.mrf.mxu1 }
 0x175   :  { %v593_v53 = vadd.f32 %v592_v51, %v569_v52 }
 0x17b   :  { %v625_v55 = vpop.f32.mrf.mxu3 }
 0x17c   :  { %v628_v56 = vadd.f32 %v625_v55, %v593_v53 }
 0x17e   :  { %v633_v58 = vadd.f32 %v864_v54, %v628_v56 }
 0x180   :  { %v634_v59 = vmax.f32 %v633_v58, 0.0 }
 0x182   :  { %v636_v60 = vrot.slane %v634_v59, 2  ;;  %v639_v62 = vrot.slane %v634_v59, 4  ;;  %v642_v0 = vrot.slane %v634_v59, 6 }
 0x184   :  { %v638_v61 = vmax.f32 %v634_v59, %v636_v60 }
 0x186   :  { %v641_v63 = vmax.f32 %v638_v61, %v639_v62 }
 0x188   :  { %v644_v4 = vmax.f32 %v641_v63, %v642_v0 }
 0x18a   :  { %654 = vrot.lane.b32.xlu1 %v644_v4, %s898_s21  ;;  %646 = vrot.lane.b32.xlu0 %v644_v4, %s899_s22 }
 0x192   :  { %650 = vrot.lane.b32.xlu0 %v644_v4, %s900_s23 }
 0x1fc   :  { %v647_v12 = vpop.permute.xlu0 %646  ;;  %v655_v48 = vpop.permute.xlu1 %654 }
 0x1fd   :  { %v649_v37 = vmax.f32 %v644_v4, %v647_v12 }
 0x204   :  { %v651_v16 = vpop.permute.xlu0 %650 }
 0x205   :  { %v653_v20 = vmax.f32 %v649_v37, %v651_v16 }
 0x207   :  { %v657_v1 = vmax.f32 %v653_v20, %v655_v48 }
 0x209   :  { %856 = vmatmul.msk.f32.vlgmr.msra.gmra.mxu2 %vm664_vm5, %v657_v1 }
 0x28c   :  { %v685_v6 = vpop.f32.mrf.mxu2 }
 0x28d   :  { %v686_v30 = vadd.f32 %v865_v5, %v685_v6 }
 0x28f   :  { %v688_v9 = vmax.f32 %v686_v30, 0.0 }
 0x291   :  { %857 = vmatmul.msk.f32.vlgmr.msrb.gmra.mxu0 %vm697_vm6, %v688_v9 }
 0x30e   :  { %v718_v13 = vpop.f32.mrf.mxu0 }
 0x30f   :  { %v719_v3 = vadd.f32 %v866_v10, %v718_v13 }
 0x311   :  { %v722_v7 = vsel %vm721_vm7, %v719_v3, -inf }
 0x312   :  { %723 = vmax.xlane.f32.xlu1 %v722_v7 }
 0x385   :  { %v724_v11 = vpop.xlane.xlu1 %723 }
 0x386   :  { %v725_v14 = vsub.f32 %v719_v3, %v724_v11 }
 0x388   :  { %v726_v15 = vmul.f32 1.442695, %v725_v14 }
 0x38a   :  { %867 = vpow2.f32 %v726_v15 }
 0x390   :  { %v868_v17 = vpop.eup %867 }
 0x391   :  { %v728_v18 = vsel %vm721_vm7, %v868_v17, 0.0 }
 0x392   :  { %729 = vadd.xlane.f32.xlu2 %v728_v18 }
 0x405   :  { %v730_v19 = vpop.xlane.xlu2 %729 }
 0x406   :  { %869 = vrcp.f32 %v730_v19  ;;  %v742_v24 = vand.u32 2147483648, %v730_v19  ;;  %v740_v27 = vand.u32 2147483647, %v730_v19  ;;  %vm736_vm9 = vweird.f32 %v730_v19 }
 0x408   :  { %v743_v31 = vor.u32 1.1754944e-38, %v742_v24  ;;  %vm741_vm11 = vcmp.eq.f32.partialorder %v740_v27, 8.507059e+37 }
 0x40c   :  { %v870_v21 = vpop.eup %869 }
 0x40d   :  { %v732_v22 = vmul.f32 %v870_v21, %v730_v19  ;;  %vm737_vm8 = vweird.f32 %v870_v21 }
 0x40e   :  { %vm738_vm10 = vmor %vm736_vm9, %vm737_vm8 }
 0x40f   :  { %v733_v23 = vsub.f32 1.0, %v732_v22 }
 0x411   :  { %v734_v25 = vmul.f32 %v870_v21, %v733_v23 }
 0x413   :  { %v735_v28 = vadd.f32 %v870_v21, %v734_v25 }
 0x415   :  { %v739_v32 = vsel %vm738_vm10, %v870_v21, %v735_v28 }
 0x416   :  { %v744_v29 = vsel %vm741_vm11, %v743_v31, %v739_v32 }
 0x417   :  { %v745_v34 = vmul.f32 %v868_v17, %v744_v29 }
 0x419   :  { %746 = vst.msk [vmem:[#allocation3] sm:$0x3] %vm721_vm7, %v745_v34 }
 0x41a   :  { %757 = dma.vmem_to_hbm [thread:$0]  %s753_s8, 32, %s755_s17, [#allocation4]  }
 0x41b   :  { %895 = dma.done.wait [#allocation4], 32  }
 0x41c   :  { %896 = vsyncadd [#allocation4], 4294967264 }
 0x41d   :  { %762 = vsyncpa [#allocation4], 1 }

</bundles_post_ra>
